<compile_context>
chip_gen: v7x
topology: tpu7x:2x2x1
jax: 0.10.0
libtpu: 0.0.40
codegen_flags: <defaults>
</compile_context>

<pallas_src>
import functools

import jax
import jax.numpy as jnp
from jax.experimental import pallas as pl
from jax.experimental.pallas import tpu as pltpu


# ---------------------------------------------------------------------------
# Helpers
# ---------------------------------------------------------------------------
def _round_up(x, m):
    return ((x + m - 1) // m) * m


def _vmem_capacity_bytes():
    try:
        cap = getattr(pltpu.get_tpu_info(), "vmem_capacity_bytes", None)
        if cap:
            return int(cap)
    except Exception:
        pass
    return 64 * 1024 * 1024  # conservative default (v7x per-core VMEM)


def _choose_tiling(hw, c, itemsize, max_block_bytes):
    """Pick a lane tile (multiple of 128) and the padded HW (multiple of tile)."""
    hw128 = _round_up(hw, 128)
    lane_budget = max(128, (max_block_bytes // max(1, c * itemsize)) // 128 * 128)
    t_max = min(hw128, lane_budget)
    # Largest multiple-of-128 divisor of hw128 within budget -> zero extra pad.
    t = t_max
    while hw128 % t:
        t -= 128
    if t < min(1024, t_max):
        # Poor divisor structure: trade <= 1/16 padding for a big lane-dense tile.
        for cand in range(t_max, t, -128):
            padded = _round_up(hw128, cand)
            if padded - hw128 <= hw128 // 16:
                return cand, padded
    return t, hw128


# ---------------------------------------------------------------------------
# Fused single-pass kernel: whole per-image slab resident in VMEM.
# ---------------------------------------------------------------------------
def _scse_fused_kernel(u_ref, wsq_ref, wex_ref, ws_ref, o_ref, *, inv_hw):
    u = u_ref[0]                                                        # (C, HWp)
    # Channel mean over the true spatial extent (padded lanes are zero).
    mean = jnp.sum(u.astype(jnp.float32), axis=1, keepdims=True) * inv_hw   # (C, 1)
    # cSE gate: two tiny MXU mat-vecs + sigmoid.
    z1 = jnp.dot(wsq_ref[...], mean, preferred_element_type=jnp.float32)    # (C//2,1)
    z2 = jnp.dot(wex_ref[...], z1, preferred_element_type=jnp.float32)      # (C, 1)
    gate_c = jax.nn.sigmoid(z2)
    # sSE gate: channel contraction on the MXU, sigmoid on the EUP.
    q = jax.nn.sigmoid(
        jnp.dot(ws_ref[...], u, preferred_element_type=jnp.float32))        # (1, HWp)
    # U * z + U * q  ==  U * (z + q)
    o_ref[0] = (u * (gate_c + q).astype(u.dtype)).astype(o_ref.dtype)


# ---------------------------------------------------------------------------
# Two-pass path, kernel 1: per-image partial channel sums, tiled over HW.
# ---------------------------------------------------------------------------
def _pool_kernel(u_ref, acc_ref):
    # u_ref:   (1, C, T) spatial tile
    # acc_ref: (1, C, 1) resident f32 partial-sum accumulator (per (n, split))
    @pl.when(pl.program_id(2) == 0)
    def _():
        acc_ref[...] = jnp.zeros_like(acc_ref)

    acc_ref[0] += jnp.sum(u_ref[0].astype(jnp.float32), axis=1, keepdims=True)


# ---------------------------------------------------------------------------
# Two-pass path, kernel 2: streaming gating (cSE gate precomputed per image).
# ---------------------------------------------------------------------------
def _gate_kernel(u_ref, gate_ref, ws_ref, o_ref):
    # u_ref: (1, C, T); gate_ref: (1, C, 1) f32 cSE gate; ws_ref: (1, C) sSE row.
    u = u_ref[0]
    q = jax.nn.sigmoid(
        jnp.dot(ws_ref[...], u, preferred_element_type=jnp.float32))        # (1, T)
    o_ref[0] = (u * (gate_ref[0] + q).astype(u.dtype)).astype(o_ref.dtype)


# ---------------------------------------------------------------------------
# Wrapper
# ---------------------------------------------------------------------------
def scse_forward(x, w_sq, w_ex, w_s, *, force_two_pass=False, max_block_bytes=None):
    """x: (N, C, H, W); w_sq: (C//2, C); w_ex: (C, C//2); w_s: (C,)."""
    N, C, H, W = x.shape
    HW = H * W
    itemsize = x.dtype.itemsize
    f32 = jnp.float32

    vmem_cap = _vmem_capacity_bytes()
    usable = vmem_cap * 3 // 4                       # leave ~25% headroom
    if max_block_bytes is None:
        max_block_bytes = (16 << 20) if vmem_cap > (96 << 20) else (8 << 20)
        max_block_bytes = min(max_block_bytes, usable // 4)

    u = x.reshape(N, C, HW)
    ws_row = w_s.reshape(1, C).astype(x.dtype)       # keep bf16 inputs on bf16 MXU
    wsq = w_sq.astype(f32)
    wex = w_ex.astype(f32)

    # ------------------ fused single-pass path ------------------
    hw_pad = _round_up(HW, 128)
    slab = C * hw_pad * itemsize
    fused_need = 4 * slab + 2 * C * hw_pad * 4 + (2 << 20)   # 2x in + 2x out + temps
    if fused_need <= usable and not force_two_pass:
        if hw_pad != HW:
            u = jnp.pad(u, ((0, 0), (0, 0), (0, hw_pad - HW)))
        out = pl.pallas_call(
            functools.partial(_scse_fused_kernel, inv_hw=1.0 / HW),
            out_shape=jax.ShapeDtypeStruct((N, C, hw_pad), x.dtype),
            grid_spec=pltpu.PrefetchScalarGridSpec(
                num_scalar_prefetch=0,
                grid=(N,),
                in_specs=[
                    pl.BlockSpec((1, C, hw_pad), lambda n: (n, 0, 0)),   # U slab
                    pl.BlockSpec((C // 2, C), lambda n: (0, 0)),         # W_sq
                    pl.BlockSpec((C, C // 2), lambda n: (0, 0)),         # W_ex
                    pl.BlockSpec((1, C), lambda n: (0, 0)),              # sSE row
                ],
                out_specs=pl.BlockSpec((1, C, hw_pad), lambda n: (n, 0, 0)),
            ),
            compiler_params=pltpu.CompilerParams(
                dimension_semantics=("parallel",),
                vmem_limit_bytes=int(min(usable, max(fused_need * 5 // 4, 4 << 20)))),
        )(u, wsq, wex, ws_row)
        return out[:, :, :HW].reshape(N, C, H, W)

    # ------------------ two-pass streaming path ------------------
    t_hw, hw_pad = _choose_tiling(HW, C, itemsize, max_block_bytes)
    if hw_pad != HW:
        u = jnp.pad(u, ((0, 0), (0, 0), (0, hw_pad - HW)))
    n_t = hw_pad // t_hw
    block_bytes = C * t_hw * itemsize
    vmem_limit = int(min(usable, max((4 * block_bytes + (1 << 20)) * 5 // 4, 4 << 20)))

    # Split the pass-1 reduction so both TensorCores work even at batch 1.
    split = 2 if (N == 1 and n_t >= 2 and n_t % 2 == 0) else 1
    n_inner = n_t // split

    # ---- pass 1: per-image partial channel sums ----
    psum = pl.pallas_call(
        _pool_kernel,
        out_shape=jax.ShapeDtypeStruct((N * split, C, 1), f32),
        grid_spec=pltpu.PrefetchScalarGridSpec(
            num_scalar_prefetch=0,
            grid=(N, split, n_inner),
            in_specs=[pl.BlockSpec((1, C, t_hw),
                                   lambda n, s, t: (n, 0, s * n_inner + t))],
            out_specs=pl.BlockSpec((1, C, 1),
                                   lambda n, s, t: (n * split + s, 0, 0)),
        ),
        compiler_params=pltpu.CompilerParams(
            dimension_semantics=("parallel", "parallel", "arbitrary"),
            vmem_limit_bytes=vmem_limit),
    )(u)

    # Fold partial sums and compute the cSE gate ONCE per image (tiny XLA ops),
    # hoisting the mat-vecs + sigmoid out of the pass-2 hot loop.
    mean = psum.reshape(N, split, C).sum(axis=1) * (1.0 / HW)      # (N, C) f32
    gate = jax.nn.sigmoid((mean @ wsq.T) @ wex.T)[:, :, None]      # (N, C, 1) f32

    # ---- pass 2: streaming gating ----
    out = pl.pallas_call(
        _gate_kernel,
        out_shape=jax.ShapeDtypeStruct((N, C, hw_pad), x.dtype),
        grid_spec=pltpu.PrefetchScalarGridSpec(
            num_scalar_prefetch=0,
            grid=(N, n_t),
            in_specs=[
                pl.BlockSpec((1, C, t_hw), lambda n, t: (n, 0, t)),    # U tile
                pl.BlockSpec((1, C, 1), lambda n, t: (n, 0, 0)),       # cSE gate
                pl.BlockSpec((1, C), lambda n, t: (0, 0)),             # sSE row
            ],
            out_specs=pl.BlockSpec((1, C, t_hw), lambda n, t: (n, 0, t)),
        ),
        compiler_params=pltpu.CompilerParams(
            dimension_semantics=("parallel", "parallel"),
            vmem_limit_bytes=vmem_limit),
    )(u, gate, ws_row)

    return out[:, :, :HW].reshape(N, C, H, W)


# ---------------------------------------------------------------------------
# Pure-JAX reference (verification only)
# ---------------------------------------------------------------------------
def scse_reference(x, w_sq, w_ex, w_s):
    # cSE
    z = jnp.mean(x, axis=(2, 3))                    # (N, C)
    z = z @ w_sq.T                                  # (N, C//2)
    z = z @ w_ex.T                                  # (N, C)
    z = jax.nn.sigmoid(z)[:, :, None, None]         # (N, C, 1, 1)
    u_cse = x * z
    # sSE
    q = jnp.einsum("nchw,c->nhw", x, w_s)           # (N, H, W)
    q = jax.nn.sigmoid(q)[:, None, :, :]            # (N, 1, H, W)
    u_sse = x * q
    return u_cse + u_sse


if __name__ == "__main__":
    key = jax.random.PRNGKey(0)
    N, C, H, W = 2, 4, 16, 16
    k_x, k_sq, k_ex, k_s = jax.random.split(key, 4)

    x = jax.random.normal(k_x, (N, C, H, W), dtype=jnp.float32)
    # 1x1 conv weights (no bias), shapes from the PyTorch module:
    #   Conv_Squeeze:    (C//2, C, 1, 1) -> (C//2, C)
    #   Conv_Excitation: (C, C//2, 1, 1) -> (C, C//2)
    #   sSE Conv1x1:     (1, C, 1, 1)    -> (C,)
    w_sq = jax.random.normal(k_sq, (C // 2, C), dtype=jnp.float32) * 0.5
    w_ex = jax.random.normal(k_ex, (C, C // 2), dtype=jnp.float32) * 0.5
    w_s = jax.random.normal(k_s, (C,), dtype=jnp.float32) * 0.5

    ref = scse_reference(x, w_sq, w_ex, w_s)

    # Fast path: fused single-pass kernel (per-image slab fits VMEM).
    out = jax.block_until_ready(scse_forward(x, w_sq, w_ex, w_s))
    assert out.shape == (N, C, H, W)
    assert jnp.allclose(out, ref, atol=1e-5, rtol=1e-5), "fused path mismatch"

    # Large-image fallback: two-pass streaming path (forced small tiles -> n_t > 1).
    out2 = jax.block_until_ready(
        scse_forward(x, w_sq, w_ex, w_s, force_two_pass=True, max_block_bytes=2048))
    assert jnp.allclose(out2, ref, atol=1e-5, rtol=1e-5), "two-pass mismatch"

    # Batch-1 two-pass path: pass-1 reduction split across both TensorCores.
    out3 = jax.block_until_ready(
        scse_forward(x[:1], w_sq, w_ex, w_s, force_two_pass=True, max_block_bytes=2048))
    assert jnp.allclose(out3, ref[:1], atol=1e-5, rtol=1e-5), "split pool mismatch"

    print("KERNEL_OK")
</pallas_src>

<mosaic_0001>
module attributes {stable_mosaic.version = 11 : i64} {
  func.func @_scse_fused_kernel(%arg0: i32, %arg1: memref<1x4x256xf32, #tpu.memory_space<vmem>>, %arg2: memref<2x4xf32, #tpu.memory_space<vmem>>, %arg3: memref<4x2xf32, #tpu.memory_space<vmem>>, %arg4: memref<1x4xf32, #tpu.memory_space<vmem>>, %arg5: memref<1x4x256xf32, #tpu.memory_space<vmem>>) attributes {dimension_semantics = [#tpu.dimension_semantics<parallel>], iteration_bounds = array<i64: 2>, scalar_prefetch = 0 : i64, scratch_operands = 0 : i64, tpu.core_type = #tpu.core_type<tc>, window_params = [{transform_indices = @transform_0, window_bounds = array<i64: 1, 4, 256>}, {pipeline_mode = #tpu.pipeline_mode<synchronous>, transform_indices = @transform_1, window_bounds = array<i64: 2, 4>}, {pipeline_mode = #tpu.pipeline_mode<synchronous>, transform_indices = @transform_2, window_bounds = array<i64: 4, 2>}, {pipeline_mode = #tpu.pipeline_mode<synchronous>, transform_indices = @transform_3, window_bounds = array<i64: 1, 4>}, {transform_indices = @transform_4, window_bounds = array<i64: 1, 4, 256>}]} {
    %c0 = arith.constant 0 : index
    %c0_0 = arith.constant 0 : index
    %c0_1 = arith.constant 0 : index
    %0 = vector.load %arg1[%c0, %c0_0, %c0_1] : memref<1x4x256xf32, #tpu.memory_space<vmem>>, vector<1x4x256xf32>
    %1 = vector.shape_cast %0 : vector<1x4x256xf32> to vector<4x256xf32>
    %cst = arith.constant dense<0.000000e+00> : vector<4xf32>
    %2 = vector.multi_reduction <add>, %1, %cst [1] : vector<4x256xf32> to vector<4xf32>
    %3 = vector.shape_cast %2 : vector<4xf32> to vector<4x1xf32>
    %cst_2 = arith.constant 3.906250e-03 : f32
    %4 = vector.broadcast %cst_2 : f32 to vector<4x1xf32>
    %5 = arith.mulf %3, %4 : vector<4x1xf32>
    %c0_3 = arith.constant 0 : index
    %c0_4 = arith.constant 0 : index
    %6 = vector.load %arg2[%c0_3, %c0_4] : memref<2x4xf32, #tpu.memory_space<vmem>>, vector<2x4xf32>
    %cst_5 = arith.constant dense<0.000000e+00> : vector<2x1xf32>
    %7 = tpu.matmul %6, %5, %cst_5 {dimension_numbers = #tpu.dot_dimension_numbers<[1], [0], [0], [1], [0, 0, 1, 1], [], []>} : vector<2x4xf32>, vector<4x1xf32>, vector<2x1xf32> -> vector<2x1xf32>
    %c0_6 = arith.constant 0 : index
    %c0_7 = arith.constant 0 : index
    %8 = vector.load %arg3[%c0_6, %c0_7] : memref<4x2xf32, #tpu.memory_space<vmem>>, vector<4x2xf32>
    %cst_8 = arith.constant dense<0.000000e+00> : vector<4x1xf32>
    %9 = tpu.matmul %8, %7, %cst_8 {dimension_numbers = #tpu.dot_dimension_numbers<[1], [0], [0], [1], [0, 0, 1, 1], [], []>} : vector<4x2xf32>, vector<2x1xf32>, vector<4x1xf32> -> vector<4x1xf32>
    %10 = arith.negf %9 : vector<4x1xf32>
    %11 = math.exp %10 : vector<4x1xf32>
    %cst_9 = arith.constant 1.000000e+00 : f32
    %12 = vector.broadcast %cst_9 : f32 to vector<4x1xf32>
    %13 = arith.addf %12, %11 : vector<4x1xf32>
    %14 = arith.divf %12, %13 : vector<4x1xf32>
    %c0_10 = arith.constant 0 : index
    %c0_11 = arith.constant 0 : index
    %15 = vector.load %arg4[%c0_10, %c0_11] : memref<1x4xf32, #tpu.memory_space<vmem>>, vector<1x4xf32>
    %cst_12 = arith.constant dense<0.000000e+00> : vector<1x256xf32>
    %16 = tpu.matmul %15, %1, %cst_12 {dimension_numbers = #tpu.dot_dimension_numbers<[1], [0], [0], [1], [0, 0, 1, 1], [], []>} : vector<1x4xf32>, vector<4x256xf32>, vector<1x256xf32> -> vector<1x256xf32>
    %17 = arith.negf %16 : vector<1x256xf32>
    %18 = math.exp %17 : vector<1x256xf32>
    %cst_13 = arith.constant 1.000000e+00 : f32
    %19 = vector.broadcast %cst_13 : f32 to vector<1x256xf32>
    %20 = arith.addf %19, %18 : vector<1x256xf32>
    %21 = arith.divf %19, %20 : vector<1x256xf32>
    %22 = vector.broadcast %14 : vector<4x1xf32> to vector<4x256xf32>
    %23 = vector.broadcast %21 : vector<1x256xf32> to vector<4x256xf32>
    %24 = arith.addf %22, %23 : vector<4x256xf32>
    %25 = arith.mulf %1, %24 : vector<4x256xf32>
    %c0_14 = arith.constant 0 : index
    %c0_15 = arith.constant 0 : index
    %c0_16 = arith.constant 0 : index
    %26 = vector.load %arg5[%c0_14, %c0_15, %c0_16] : memref<1x4x256xf32, #tpu.memory_space<vmem>>, vector<1x4x256xf32>
    %27 = vector.shape_cast %26 : vector<1x4x256xf32> to vector<4x256xf32>
    %28 = vector.shape_cast %25 : vector<4x256xf32> to vector<1x4x256xf32>
    tpu.vector_store %arg5[%c0_14, %c0_15, %c0_16], %28 {strides = array<i32>} : memref<1x4x256xf32, #tpu.memory_space<vmem>>, vector<1x4x256xf32>,
    return
  }
  func.func @transform_0(%arg0: i32) -> (i32, i32, i32) {
    %c0_i32 = arith.constant 0 : i32
    %c0_i32_0 = arith.constant 0 : i32
    %c0_i32_1 = arith.constant 0 : i32
    return %arg0, %c0_i32, %c0_i32_0 : i32, i32, i32
  }
  func.func @transform_1(%arg0: i32) -> (i32, i32) {
    %c0_i32 = arith.constant 0 : i32
    %c0_i32_0 = arith.constant 0 : i32
    %c0_i32_1 = arith.constant 0 : i32
    return %c0_i32, %c0_i32_0 : i32, i32
  }
  func.func @transform_2(%arg0: i32) -> (i32, i32) {
    %c0_i32 = arith.constant 0 : i32
    %c0_i32_0 = arith.constant 0 : i32
    %c0_i32_1 = arith.constant 0 : i32
    return %c0_i32, %c0_i32_0 : i32, i32
  }
  func.func @transform_3(%arg0: i32) -> (i32, i32) {
    %c0_i32 = arith.constant 0 : i32
    %c0_i32_0 = arith.constant 0 : i32
    %c0_i32_1 = arith.constant 0 : i32
    return %c0_i32, %c0_i32_0 : i32, i32
  }
  func.func @transform_4(%arg0: i32) -> (i32, i32, i32) {
    %c0_i32 = arith.constant 0 : i32
    %c0_i32_0 = arith.constant 0 : i32
    %c0_i32_1 = arith.constant 0 : i32
    return %arg0, %c0_i32, %c0_i32_0 : i32, i32, i32
  }
}

</mosaic_0001>

<bundles_post_ra>
// kernel: tpu_custom_call.1
= control target key start
LH: loop header
LB: loop body
LE: loop exit
PB: predicated region body
PF: predicated region fallthrough
CT: control target
= control target key end

     0   :  { %9 = vsyncpa [#allocation3], 0  ;;  %s1002_s0 = inlined_call_operand.hbm [shape: f32[2,4,256], index: 0, kind: input, shape index: {}]   ;;  %s1003_s1 = inlined_call_operand.vmem [shape: f32[2,4], index: 1, kind: input, shape index: {}]   ;;  %s1004_s2 = inlined_call_operand.vmem [shape: f32[4,2], index: 2, kind: input, shape index: {}]   ;;  %s1005_s3 = inlined_call_operand.vmem [shape: f32[1,4], index: 3, kind: input, shape index: {}]   ;;  %s1006_s4 = inlined_call_operand.hbm [shape: f32[2,4,256], index: 4, kind: output, shape index: {}]  }
   0x1   :  { %11 = vsyncpa [#allocation3 + $0x1], 0 }
   0x2   :  { %12 = vsyncpa [#allocation4], 0 }
   0x3   :  { %14 = vsyncpa [#allocation4 + $0x1], 0  ;;  %s816_s15 = smov 0   ;;  %s818_s16 = smov 0  }
   0x4   :  { %s820_s17 = smov 0   ;;  %s822_s18 = smov 0  }
   0x5 LB: > { %s837_s19 = sadd.s32 4294967295, %s784_s18   ;;  %s585_s20 = sadd.s32 4294967294, %s784_s18   ;;  %s784_s18 = sphi %s822_s18, %s1021_s18   ;;  %s780_s17 = sphi %s820_s17, %s1020_s17   ;;  %s776_s16 = sphi %s818_s16, %s1019_s16   ;;  %s772_s15 = sphi %s816_s15, %s1018_s15  }
   0x6   : > { %s841_s21 = sadd.s32 1, %s784_s18   ;;  %s27_s22 = sadd.s32 1, %s780_s17 }
   0x7   : > { %s24_s23 = ssub.s32 %s784_s18, %s841_s21  ;;  %p34_p0 = scmp.ne.s32.totalorder %s780_s17, %s776_s16 }
   0x8   : > { %p25_p1 = scmp.eq.s32.totalorder %s24_s23, 0  ;;  %p35_p2 = scmp.eq.s32.totalorder %s784_s18, 0 }
   0x9   : > { %p40_p3 = scmp.ne.s32.totalorder %s776_s16, %s772_s15  ;;  %p41_p4 = scmp.eq.s32.totalorder %s837_s19, 0 }
   0xa   : > { %s853_s24 = scalar_select %p25_p1, %s780_s17, %s27_s22  }
   0xb   : > { %p855_p5 = por %p35_p2, %p34_p0  ;;  %p859_p6 = por %p41_p4, %p40_p3 }
   0xc   : > { %p127_p7 = scmp.eq.s32.totalorder %s837_s19, 1  ;;  %p133_p8 = scmp.eq.s32.totalorder %s585_s20, 1 }
   0xd   : > { %p637_p10 = scmp.lt.s32.totalorder %s784_s18, 2  ;;  %s162_s29 = sand.u32 1, %s780_s17  }
   0xe   : > { %p866_p11 = por %p127_p7, %p34_p0  ;;  %p870_p12 = por %p133_p8, %p40_p3 }
   0xf   : > { %s609_s30 = sshll.u32 %s784_s18, 7  ;;  %s588_s5 = sshll.u32 %s162_s29, 3 }
  0x10   : > { %s1010_s27 = scalar_select %p866_p11, 1, 0 }
  0x11   : > { %s1011_s28 = scalar_select %p870_p12, 1, 0 }
  0x12   : > { %s879_s8 = scalar_lea.hbm %s1002_s0, %s609_s30  ;;  %s166_s9 = scalar_lea.vmem [#allocation2], %s588_s5 }
  0x13   : > { %s174_s10 = sshll.u32 %s166_s9, 4  ;;  %p883_p13 = pnand %p637_p10, %p855_p5  ;;  %s887_s10 = int_to_ptr.vmem [resolvable:$true] %s174_s10 }
  0x14   : > { %s163_s12 = scalar_lea.sflag [#allocation3], %s162_s29  ;;  %s688_s13 = scalar_lea.hbm %s879_s8, 128 }
  0x15   : > { %p689_p2 = scmp.ne.s32.totalorder %s879_s8, %s688_s13  ;;  %p690_p3 = pneg %p883_p13 }
  0x16   : > { %s693_s22 = scalar_lea.hbm %s1002_s0, 256  ;;  %p694_p5 = scmp.lt.u32.totalorder %s879_s8, %s1002_s0 }
  0x17   : > { %p691_p4 = pnand %p690_p3, %p689_p2  ;;  %p695_p8 = scmp.lt.u32.totalorder %s693_s22, %s688_s13 }
  0x18   : > { %p697_p9 = scmp.lt.u32.totalorder %s688_s13, %s879_s8 }
  0x19   : > { %p692_p7 = pneg %p691_p4  ;;  %p696_p10 = por %p695_p8, %p694_p5 }
  0x1b   : > { %p698_p0 = por %p697_p9, %p696_p10 }
  0x1d   : > { %p699_p1 = pnand %p698_p0, %p692_p7 }
  0x1f   : > { %702 = shalt.err (!%p699_p1)
}
  0x20   : > { %s703_s29 = scalar_lea.vmem %s887_s10, 128  ;;  %s786_s30 = smov [#allocation2]  }
  0x21   : > { %p704_p2 = scmp.ne.s32.totalorder %s887_s10, %s703_s29  ;;  %s708_s5 = sshll.u32 %s786_s30, 4  ;;  %s709_s5 = int_to_ptr.vmem [resolvable:$false] %s708_s5 }
  0x22   : > { %s710_s6 = scalar_lea.vmem %s709_s5, 256  ;;  %p711_p11 = scmp.lt.s32.totalorder %s887_s10, %s709_s5 }
  0x23   : > { %p706_p4 = pnand %p704_p2, %p690_p3  ;;  %p712_p5 = scmp.lt.s32.totalorder %s710_s6, %s703_s29 }
  0x25   : > { %p707_p12 = pneg %p706_p4  ;;  %p713_p8 = por %p712_p5, %p711_p11 }
  0x27   : > { %p714_p9 = pnand %p713_p8, %p707_p12 }
  0x29   : > { %717 = shalt.err (!%p714_p9)
}
  0x2a   : > { %632 = dma.hbm_to_vmem [thread:$0]  (!%p883_p13), %s879_s8, 128, %s887_s10, %s163_s12  }
  0x2b   : > { %p1013_p0 = scmp.lt.s32.totalorder %s784_s18, 3  ;;  %p1014_p1 = scmp.ge.s32.totalorder %s784_s18, 1 }
  0x2d   : > { %p180_p3 = pnand %p1014_p1, %p1013_p0 }
  0x2e   : > { %s921_s7 = sand.u32 (!%p180_p3), 1, %s776_s16  }
  0x2f   : > { %183 = sbr.rel (%p180_p3) target bundleno = 805 (0x325), region = 36  ;;  %s592_s9 = sshll.u32 (!%p180_p3), %s921_s7, 3 }
  0x30   : > { %s186_s13 = scalar_lea.sflag (!%p180_p3), [#allocation3], %s921_s7  ;;  %s189_s11 = scalar_lea.vmem (!%p180_p3), [#allocation2], %s592_s9 }
  0x36   : > { %763 = dma.done.wait (%p859_p6), %s186_s13, 128  }
  0x37   : > { %765 = vsyncadd (%p859_p6), %s186_s13, 4294967168  ;;  %vm218_vm0 = vcmask 1043456   ;;  %v931_v0 = vld [vmem:[%s189_s11] sm:$0xff]  ;;  %v787_v5 = vmov 0.0   ;;  %vm788_vm1 = vmmov 0   ;;  %vm226_vm2 = vcmask 31744  }
  0x38   : > { %v216_v1 = vcombine.high %v931_v0, %v931_v0  ;;  %v219_v2 = vsel %vm218_vm0, %v931_v0, 0.0  ;;  %615 = vmatprep.subr.mxu0 %v787_v5  ;;  %620 = vmatprep.subr.mxu1 %v787_v5  ;;  %v225_v8 = vld [vmem:[%s1003_s1] sm:$0x3]  ;;  %vm308_vm3 = vcmask 1041408   ;;  %vm304_vm4 = vcmask 15360   ;;  %s610_s22 = sshll.u32 %s837_s19, 7 }
  0x39   : > { %617 = vmatprep.mubr.msk.f32.mxu0 %vm788_vm1, %v787_v5  ;;  %622 = vmatprep.mubr.msk.f32.mxu1 %vm788_vm1, %v787_v5  ;;  %v388_v9 = vld [vmem:[%s1005_s3] sm:$0x1]  ;;  %v789_v13 = vmov 0   ;;  %v484_v28 = vlaneseq  ;;  %s213_s23 = scalar_lea.vmem [#allocation5], %s592_s9  ;;  %s958_s5 = scalar_lea.hbm %s1006_s4, %s610_s22 }
  0x3a   : > { %v220_v3 = vsel %vm218_vm0, %v216_v1, 0.0  ;;  %v303_v10 = vld [vmem:[%s1004_s2] sm:$0xf]  ;;  %674 = vset.pattern.permute.xlu0 %v789_v13  ;;  %s515_s25 = sshll.u32 %s213_s23, 4  ;;  %s501_s6 = scalar_lea.sflag [#allocation4], %s921_s7  ;;  %s960_s25 = int_to_ptr.vmem [resolvable:$true] %s515_s25 }
  0x3b   : > { %v221_v4 = vadd.f32 %v220_v3, %v219_v2  ;;  %v485_v29 = vshrl.u32 %v484_v28, 7  ;;  %s718_s13 = scalar_lea.vmem %s960_s25, 128  ;;  %p1015_p11 = scmp.ne.s32.totalorder %s1010_s27, 0 }
  0x3c   : > { %p719_p6 = scmp.ne.s32.totalorder %s960_s25, %s718_s13  ;;  %s790_s19 = smov [#allocation5]  }
  0x3d   : > { %222 = vadd.xlane.f32.xlu0 %v221_v4  ;;  %v486_v31 = vsub.s32 0, %v485_v29  ;;  %s722_s9 = sshll.u32 %s790_s19, 4  ;;  %s723_s9 = int_to_ptr.vmem [resolvable:$false] %s722_s9 }
  0x3e   : > { %p720_p12 = pnand %p719_p6, %p1015_p11  ;;  %s724_s11 = scalar_lea.vmem %s723_s9, 256 }
  0x3f   : > { %p725_p7 = scmp.lt.s32.totalorder %s960_s25, %s723_s9  ;;  %p726_p10 = scmp.lt.s32.totalorder %s724_s11, %s718_s13 }
  0x40   : > { %p721_p13 = pneg %p720_p12 }
  0x41   : > { %p727_p2 = por %p726_p10, %p725_p7 }
  0x43   : > { %p728_p4 = pnand %p727_p2, %p721_p13 }
  0xca   : > { %v223_v6 = vpop.xlane.xlu0 %222 }
  0xcb   : > { %v224_v7 = vmul.f32 0.00390625, %v223_v6 }
  0xcd   : > { %616 = vmatpush3.msk.msra.mxu0 %vm218_vm0, %v224_v7 }
  0xce   : > { %618 = vmatmul.mubr.msk.f32.vlgmr.msra.gmra.mrb[0].mxu0 %vm226_vm2, %v225_v8  ;;  %599 = vmatprep.subr.msk.mxu0 %vm218_vm0, %v216_v1 }
  0xcf   : > { %600 = vmatpush1.msk.msra.mxu0 %vm218_vm0, %v931_v0  ;;  %460 = vmatprep.mubr.f32.mxu0 %v787_v5 }
  0xd2   : > { %601 = vmatmul.mubr.msk.f32.vlgmr.msra.gmra.mrb[2].mxu0 %vm226_vm2, %v388_v9 }
 0x1a1   : > { %v299_v11 = vpop.f32.mrb[0].mxu0 }
 0x1a2   : > { %v619_v12 = vpop.f32.mrb[1].mxu0  ;;  %621 = vmatpush3.msk.msra.mxu1 %vm308_vm3, %v299_v11 }
 0x1a3   : > { %623 = vmatmul.mubr.msk.f32.vlgmr.msra.gmra.mrb[0].mxu1 %vm304_vm4, %v303_v10 }
 0x1a5   : > { %v462_v14 = vpop.f32.mrb[2].mxu0 }
 0x1a6   : > { %v464_v15 = vpop.f32.mrb[3].mxu0  ;;  %v602_v22 = vmul.f32 -1.442695, %v462_v14 }
 0x1a7   : > { %v603_v23 = vmul.f32 -1.442695, %v464_v15 }
 0x276   : > { %v378_v16 = vpop.f32.mrb[0].mxu1 }
 0x277   : > { %v598_v17 = vmul.f32 -1.442695, %v378_v16  ;;  %v624_v18 = vpop.f32.mrb[1].mxu1 }
 0x279   : > { %676 = vpow2.f32 %v598_v17 }
 0x283   : > { %v677_v19 = vpop.eup %676 }
 0x284   : > { %v385_v20 = vadd.f32 1.0, %v677_v19 }
 0x286   : > { %678 = vrcp.f32 %v385_v20 }
 0x287   : > { %680 = vpow2.f32 %v602_v22 }
 0x288   : > { %682 = vpow2.f32 %v603_v23 }
 0x290   : > { %v679_v21 = vpop.eup %678 }
 0x291   : > { %481 = vperm.xlu0 %674, %v679_v21   ;;  %v681_v24 = vpop.eup %680 }
 0x292   : > { %v683_v25 = vpop.eup %682  ;;  %v473_v26 = vadd.f32 1.0, %v681_v24 }
 0x293   : > { %v474_v27 = vadd.f32 1.0, %v683_v25 }
 0x294   : > { %684 = vrcp.f32 %v473_v26 }
 0x295   : > { %686 = vrcp.f32 %v474_v27 }
 0x29e   : > { %v685_v30 = vpop.eup %684 }
 0x29f   : > { %v687_v32 = vpop.eup %686  ;;  %v487_v33 = vrot.slane %v685_v30, %v486_v31 }
 0x2a0   : > { %v491_v34 = vrot.slane %v687_v32, %v486_v31 }
 0x310   : > { %v482_v35 = vpop.permute.xlu0 %481 }
 0x311   : > { %v492_v36 = vadd.f32 %v487_v33, %v482_v35  ;;  %v493_v37 = vadd.f32 %v491_v34, %v482_v35 }
 0x313   : > { %v496_v38 = vcombine.low %v492_v36, %v493_v37 }
 0x315   : > { %v498_v39 = vmul.f32 %v496_v38, %v931_v0 }
 0x317   : > { %499 = vst [vmem:[%s213_s23] sm:$0xff] %v498_v39 }
 0x318   : > { %731 = shalt.err (!%p728_p4)
}
 0x319   : > { %s732_s7 = scalar_lea.hbm %s958_s5, 128  ;;  %s736_s10 = scalar_lea.hbm %s1006_s4, 256 }
 0x31a   : > { %p733_p5 = scmp.ne.s32.totalorder %s958_s5, %s732_s7  ;;  %p737_p0 = scmp.lt.u32.totalorder %s958_s5, %s1006_s4 }
 0x31b   : > { %p738_p1 = scmp.lt.u32.totalorder %s736_s10, %s732_s7  ;;  %p740_p6 = scmp.lt.u32.totalorder %s732_s7, %s958_s5 }
 0x31c   : > { %p734_p8 = pnand %p733_p5, %p1015_p11 }
 0x31d   : > { %p739_p3 = por %p738_p1, %p737_p0 }
 0x31e   : > { %p735_p9 = pneg %p734_p8 }
 0x31f   : > { %p741_p12 = por %p740_p6, %p739_p3 }
 0x321   : > { %p742_p13 = pnand %p741_p12, %p735_p9 }
 0x323   : > { %745 = shalt.err (!%p742_p13)
}
 0x324   : > { %627 = dma.vmem_to_hbm [thread:$0]  (%p1015_p11), %s960_s25, 128, %s958_s5, %s501_s6  }
 0x325 PF: > { %s527_s20 = sand.u32 1, %s772_s15   ;;  %p1016_p7 = scmp.ne.s32.totalorder %s1011_s28, 0 }
 0x326   : > { %p1017_p10 = scmp.ge.s32.totalorder %s784_s18, 2  ;;  %s528_s22 = scalar_lea.sflag [#allocation4], %s527_s20 }
 0x328   : > { %p634_p2 = pnand %p1017_p10, %p1016_p7 }
 0x32a   : > { %767 = dma.done.wait (!%p634_p2), %s528_s22, 128  }
 0x32b   : > { %769 = vsyncadd (!%p634_p2), %s528_s22, 4294967168  ;;  %p17_p4 = scmp.ge.s32.totalorder %s841_s21, 4   ;;  %s1018_s15 = smov %s776_s16 }
 0x32c   : > { %s1019_s16 = smov %s780_s17  ;;  %s1020_s17 = smov %s853_s24 }
 0x32d   : > { %s1021_s18 = smov %s841_s21  ;;  %19 = sbr.rel (!%p17_p4) target bundleno = 5 (0x5), region = 81 }
 0x334   :  { %533 = vsyncpa [#allocation3], 1 }
 0x335   :  { %535 = vsyncpa [#allocation3 + $0x1], 1 }
 0x336   :  { %536 = vsyncpa [#allocation4], 1 }
 0x337   :  { %538 = vsyncpa [#allocation4 + $0x1], 1 }

</bundles_post_ra>
